<compile_context>
chip_gen: v5e
topology: v5e:2x2
jax: 0.10.0
libtpu: 0.0.40
codegen_flags: <defaults>
</compile_context>

<pallas_src>
import functools
import math

import jax
import jax.numpy as jnp
from jax.experimental import pallas as pl
from jax.experimental.pallas import tpu as pltpu


# --------------------------------------------------------------------------
# Kernel
# --------------------------------------------------------------------------
def scorenet_kernel(data_ref, w_ref, b_ref, out_ref, *, embed_dim):
    E = embed_dim
    H = E // 2
    two_pi = jnp.float32(2.0 * math.pi)

    def dot(a, b):
        return jnp.dot(a, b, preferred_element_type=jnp.float32)

    data = data_ref[...]                                  # (B, 16)
    B = data.shape[0]

    t = data[:, 6:7]                                      # (B, 1)

    # GaussianFourierProjection: concat([sin, cos])(t * W * 2*pi).
    # b_slab row 0 holds [W, W], so one sin, one cos and a lane-select produce
    # the concatenated (B, E) feature with no explicit concat.
    gw = b_ref[0:1, 0:E]                                  # (1, E) = [W, W]
    phase = (t * gw) * two_pi                             # same associativity as ref
    lane = jax.lax.broadcasted_iota(jnp.int32, (B, E), 1)
    fourier = jnp.where(lane < H, jnp.sin(phase), jnp.cos(phase))     # (B, E)

    # embed = sigmoid(fourier @ We + be)
    embed = jax.nn.sigmoid(dot(fourier, w_ref[0:E, 0:E]) + b_ref[1:2, 0:E])

    # Fused lin1 + lin_embed + lin_embed2 in ONE dot:
    #   lhs = [data[:, 0:8] | embed]        (B, 8+E)
    #   W   = [[w1_pad,  0   ],             (8+E, 2E)
    #          [Wle,     Wle2]]
    #   r[:, :E] = x@w1 + embed@Wle + (b1 + ble)
    #   r[:, E:] = embed@Wle2 + ble2
    # w1 is zero-padded to 8 rows so data columns 6..7 (t, L[...,0]) hit zeros.
    lhs = jnp.concatenate([data[:, 0:8], embed], axis=1)  # (B, 8+E)
    r = dot(lhs, w_ref[E:2 * E + 8, :]) + b_ref[2:3, :]   # (B, 2E)
    h = r[:, 0:E]
    emb_b = r[:, E:2 * E]

    h = jax.nn.sigmoid(dot(h, w_ref[2 * E + 8:3 * E + 8, 0:E]) + b_ref[3:4, 0:E])
    h = jax.nn.sigmoid(dot(h, w_ref[3 * E + 8:4 * E + 8, 0:E]) + b_ref[4:5, 0:E]) + emb_b
    h = jax.nn.sigmoid(dot(h, w_ref[4 * E + 8:5 * E + 8, 0:E]) + b_ref[5:6, 0:E])
    h = dot(h, w_ref[5 * E + 8:6 * E + 8, 0:E]) + b_ref[6:7, 0:E]     # cols 0:3 valid

    # out = L @ (h - p) as lane-sliced multiply-adds (L flattened column-major
    # in the data slab: Lc[:, 3k:3k+3] == L[:, :, k]).
    d = h[:, 0:3] - data[:, 3:6]                          # (B, 3)
    Lc = data[:, 7:16]                                    # (B, 9)
    out_ref[...] = (Lc[:, 0:3] * d[:, 0:1]
                    + Lc[:, 3:6] * d[:, 1:2]
                    + Lc[:, 6:9] * d[:, 2:3])


# --------------------------------------------------------------------------
# Parameter init (per-layer tensors, mirrors the PyTorch module) + packing
# --------------------------------------------------------------------------
def init_params(key, embed_dim):
    ks = jax.random.split(key, 17)
    E = embed_dim

    def lin(kw, kb, n_in, n_out):
        bound = 1.0 / math.sqrt(n_in)
        w = jax.random.uniform(kw, (n_in, n_out), jnp.float32, -bound, bound)
        b = jax.random.uniform(kb, (1, n_out), jnp.float32, -bound, bound)
        return w, b

    params = {}
    # GaussianFourierProjection W: randn(E//2) * 30.0, frozen
    params["w_gfp"] = jax.random.normal(ks[0], (1, E // 2), jnp.float32) * 30.0
    params["we"], params["be"] = lin(ks[1], ks[2], E, E)       # embed Linear
    params["wle"], params["ble"] = lin(ks[3], ks[4], E, E)     # lin_embed
    params["wle2"], params["ble2"] = lin(ks[5], ks[6], E, E)   # lin_embed2
    params["w1"], params["b1"] = lin(ks[7], ks[8], 6, E)       # lin1
    params["w2"], params["b2"] = lin(ks[9], ks[10], E, E)      # lin2
    params["w3"], params["b3"] = lin(ks[11], ks[12], E, E)     # lin3
    params["w4"], params["b4"] = lin(ks[13], ks[14], E, E)     # lin4
    params["w5"], params["b5"] = lin(ks[15], ks[16], E, 3)     # lin5
    return params


def pack_params(params, embed_dim):
    """Pack the per-layer parameters into two VMEM-friendly slabs."""
    E = embed_dim
    assert E % 8 == 0, "embed_dim must be a multiple of 8 for the slab layout"
    W = 2 * E
    f32 = jnp.float32

    def pad_wide(w):
        w = jnp.asarray(w, f32)
        return jnp.pad(w, ((0, 0), (0, W - w.shape[1])))

    # Fused (8+E, 2E) block for the single lin1 + lin_embed(+2) dot:
    #   rows [0, 8)   : [w1 zero-padded to 8 rows | 0]
    #   rows [8, 8+E) : [Wle | Wle2]
    w1_pad = jnp.pad(jnp.asarray(params["w1"], f32),
                     ((0, 8 - params["w1"].shape[0]), (0, 0)))           # (8, E)
    fused_top = jnp.pad(w1_pad, ((0, 0), (0, W - E)))                    # (8, 2E)
    fused_bot = jnp.concatenate([params["wle"], params["wle2"]],
                                axis=1).astype(f32)                      # (E, 2E)

    w_slab = jnp.concatenate([
        pad_wide(params["we"]),                                          # [0, E)
        fused_top,                                                       # [E, E+8)
        fused_bot,                                                       # [E+8, 2E+8)
        pad_wide(params["w2"]),                                          # [2E+8, 3E+8)
        pad_wide(params["w3"]),                                          # [3E+8, 4E+8)
        pad_wide(params["w4"]),                                          # [4E+8, 5E+8)
        pad_wide(params["w5"]),                                          # [5E+8, 6E+8)
    ], axis=0)                                                           # (6E+8, 2E)

    def row(v):
        v = jnp.asarray(v, f32).reshape(-1)
        return jnp.pad(v, (0, W - v.shape[0]))[None, :]

    b_slab = jnp.concatenate([
        row(jnp.tile(params["w_gfp"].reshape(-1), 2)),                   # GFP freqs [W, W]
        row(params["be"]),
        row(jnp.concatenate([(params["b1"] + params["ble"]).reshape(-1),
                             params["ble2"].reshape(-1)])),              # folded biases
        row(params["b2"]),
        row(params["b3"]),
        row(params["b4"]),
        row(params["b5"]),
        row(jnp.zeros((1,), f32)),                                       # pad to 8 rows
    ], axis=0)                                                           # (8, 2E)

    return w_slab, b_slab


# --------------------------------------------------------------------------
# Wrapper
# --------------------------------------------------------------------------
def scorenet_forward(x, t, L, G, w_slab, b_slab, *, embed_dim):
    # G accepted for signature parity with the PyTorch module; unused in forward.
    # NOTE: call this under one jit/scan when looping over diffusion steps so
    # the slab DMAs + pallas_call launch overhead are amortized across steps.
    del G
    B = x.shape[0]
    x = x.astype(jnp.float32)
    t2 = t.reshape(B, 1).astype(jnp.float32)
    # Column-major flatten of L so Lc[:, 3k:3k+3] == L[:, :, k].
    L_cm = jnp.transpose(L.astype(jnp.float32), (0, 2, 1)).reshape(B, 9)
    data = jnp.concatenate([x, t2, L_cm], axis=-1)        # (B, 16)

    kernel = functools.partial(scorenet_kernel, embed_dim=embed_dim)
    return pl.pallas_call(
        kernel,
        out_shape=jax.ShapeDtypeStruct((B, 3), jnp.float32),
        in_specs=[pl.BlockSpec(memory_space=pltpu.MemorySpace.VMEM)] * 3,
        out_specs=pl.BlockSpec(memory_space=pltpu.MemorySpace.VMEM),
    )(data, w_slab, b_slab)


# --------------------------------------------------------------------------
# Pure-JAX reference (mirrors the PyTorch forward) for verification
# --------------------------------------------------------------------------
def scorenet_reference(x, t, L, G, params):
    del G
    x = x.astype(jnp.float32)
    t = t.astype(jnp.float32)
    x_proj = t[:, None] * params["w_gfp"][0][None, :] * (2.0 * math.pi)
    gfp = jnp.concatenate([jnp.sin(x_proj), jnp.cos(x_proj)], axis=-1)
    embed = jax.nn.sigmoid(gfp @ params["we"] + params["be"])
    h = x @ params["w1"] + params["b1"]
    h = h + embed @ params["wle"] + params["ble"]
    h = jax.nn.sigmoid(h @ params["w2"] + params["b2"])
    h = jax.nn.sigmoid(h @ params["w3"] + params["b3"]) + embed @ params["wle2"] + params["ble2"]
    h = jax.nn.sigmoid(h @ params["w4"] + params["b4"])
    h = h @ params["w5"] + params["b5"]
    p = x[:, 3:]
    return jnp.einsum("bij,bj->bi", L, h - p)


if __name__ == "__main__":
    EMBED_DIM = 32
    BATCH = 8

    key = jax.random.PRNGKey(0)
    k_params, k_x, k_t, k_L, k_G = jax.random.split(key, 5)

    params = init_params(k_params, EMBED_DIM)
    w_slab, b_slab = pack_params(params, EMBED_DIM)

    x = jax.random.normal(k_x, (BATCH, 6), jnp.float32)
    t = jax.random.uniform(k_t, (BATCH,), jnp.float32, 0.01, 1.0)
    L = jax.random.normal(k_L, (BATCH, 3, 3), jnp.float32)
    G = jax.random.normal(k_G, (BATCH, 3, 3), jnp.float32)  # unused by forward

    fwd = jax.jit(functools.partial(scorenet_forward, embed_dim=EMBED_DIM))
    out = jax.block_until_ready(fwd(x, t, L, G, w_slab, b_slab))

    ref = jax.block_until_ready(scorenet_reference(x, t, L, G, params))
    assert out.shape == (BATCH, 3)
    err = jnp.max(jnp.abs(out - ref))
    assert jnp.allclose(out, ref, atol=2e-5, rtol=2e-5), f"mismatch: max abs err = {err}"

    print("KERNEL_OK")
</pallas_src>

<mosaic_0001>
module attributes {stable_mosaic.version = 11 : i64} {
  func.func @scorenet_kernel(%arg0: memref<8x16xf32, #tpu.memory_space<vmem>>, %arg1: memref<200x64xf32, #tpu.memory_space<vmem>>, %arg2: memref<8x64xf32, #tpu.memory_space<vmem>>, %arg3: memref<8x3xf32, #tpu.memory_space<vmem>>) attributes {dimension_semantics = [], scalar_prefetch = 0 : i64, scratch_operands = 0 : i64, tpu.core_type = #tpu.core_type<tc>} {
    %c0 = arith.constant 0 : index
    %c0_0 = arith.constant 0 : index
    %0 = vector.load %arg0[%c0, %c0_0] : memref<8x16xf32, #tpu.memory_space<vmem>>, vector<8x16xf32>
    %1 = vector.extract_strided_slice %0 {offsets = [0, 6], sizes = [8, 1], strides = [1, 1]} : vector<8x16xf32> to vector<8x1xf32>
    %c0_1 = arith.constant 0 : index
    %c0_2 = arith.constant 0 : index
    %2 = vector.load %arg2[%c0_1, %c0_2] : memref<8x64xf32, #tpu.memory_space<vmem>>, vector<1x32xf32>
    %3 = vector.broadcast %1 : vector<8x1xf32> to vector<8x32xf32>
    %4 = vector.broadcast %2 : vector<1x32xf32> to vector<8x32xf32>
    %5 = arith.mulf %3, %4 : vector<8x32xf32>
    %cst = arith.constant 6.28318548 : f32
    %6 = vector.broadcast %cst : f32 to vector<8x32xf32>
    %7 = arith.mulf %5, %6 : vector<8x32xf32>
    %8 = tpu.iota {dimensions = array<i32: 1>} : vector<8x32xi32>
    %c16_i32 = arith.constant 16 : i32
    %9 = vector.broadcast %c16_i32 : i32 to vector<8x32xi32>
    %10 = arith.cmpi slt, %8, %9 : vector<8x32xi32>
    %11 = math.sin %7 : vector<8x32xf32>
    %12 = math.cos %7 : vector<8x32xf32>
    %13 = arith.select %10, %11, %12 : vector<8x32xi1>, vector<8x32xf32>
    %c0_3 = arith.constant 0 : index
    %c0_4 = arith.constant 0 : index
    %14 = vector.load %arg1[%c0_3, %c0_4] : memref<200x64xf32, #tpu.memory_space<vmem>>, vector<32x32xf32>
    %cst_5 = arith.constant dense<0.000000e+00> : vector<8x32xf32>
    %15 = tpu.matmul %13, %14, %cst_5 {dimension_numbers = #tpu.dot_dimension_numbers<[1], [0], [0], [1], [0, 0, 1, 1], [], []>} : vector<8x32xf32>, vector<32x32xf32>, vector<8x32xf32> -> vector<8x32xf32>
    %c1 = arith.constant 1 : index
    %c0_6 = arith.constant 0 : index
    %16 = vector.load %arg2[%c1, %c0_6] : memref<8x64xf32, #tpu.memory_space<vmem>>, vector<1x32xf32>
    %17 = vector.broadcast %16 : vector<1x32xf32> to vector<8x32xf32>
    %18 = arith.addf %15, %17 : vector<8x32xf32>
    %19 = arith.negf %18 : vector<8x32xf32>
    %20 = math.exp %19 : vector<8x32xf32>
    %cst_7 = arith.constant 1.000000e+00 : f32
    %21 = vector.broadcast %cst_7 : f32 to vector<8x32xf32>
    %22 = arith.addf %21, %20 : vector<8x32xf32>
    %23 = arith.divf %21, %22 : vector<8x32xf32>
    %24 = vector.extract_strided_slice %0 {offsets = [0, 0], sizes = [8, 8], strides = [1, 1]} : vector<8x16xf32> to vector<8x8xf32>
    %25 = tpu.concatenate %24, %23 in 1 : vector<8x8xf32>, vector<8x32xf32> -> vector<8x40xf32>
    %c32 = arith.constant 32 : index
    %c0_8 = arith.constant 0 : index
    %26 = vector.load %arg1[%c32, %c0_8] : memref<200x64xf32, #tpu.memory_space<vmem>>, vector<40x64xf32>
    %cst_9 = arith.constant dense<0.000000e+00> : vector<8x64xf32>
    %27 = tpu.matmul %25, %26, %cst_9 {dimension_numbers = #tpu.dot_dimension_numbers<[1], [0], [0], [1], [0, 0, 1, 1], [], []>} : vector<8x40xf32>, vector<40x64xf32>, vector<8x64xf32> -> vector<8x64xf32>
    %c2 = arith.constant 2 : index
    %c0_10 = arith.constant 0 : index
    %28 = vector.load %arg2[%c2, %c0_10] : memref<8x64xf32, #tpu.memory_space<vmem>>, vector<1x64xf32>
    %29 = vector.broadcast %28 : vector<1x64xf32> to vector<8x64xf32>
    %30 = arith.addf %27, %29 : vector<8x64xf32>
    %31 = vector.extract_strided_slice %30 {offsets = [0, 0], sizes = [8, 32], strides = [1, 1]} : vector<8x64xf32> to vector<8x32xf32>
    %32 = vector.extract_strided_slice %30 {offsets = [0, 32], sizes = [8, 32], strides = [1, 1]} : vector<8x64xf32> to vector<8x32xf32>
    %c72 = arith.constant 72 : index
    %c0_11 = arith.constant 0 : index
    %33 = vector.load %arg1[%c72, %c0_11] : memref<200x64xf32, #tpu.memory_space<vmem>>, vector<32x32xf32>
    %cst_12 = arith.constant dense<0.000000e+00> : vector<8x32xf32>
    %34 = tpu.matmul %31, %33, %cst_12 {dimension_numbers = #tpu.dot_dimension_numbers<[1], [0], [0], [1], [0, 0, 1, 1], [], []>} : vector<8x32xf32>, vector<32x32xf32>, vector<8x32xf32> -> vector<8x32xf32>
    %c3 = arith.constant 3 : index
    %c0_13 = arith.constant 0 : index
    %35 = vector.load %arg2[%c3, %c0_13] : memref<8x64xf32, #tpu.memory_space<vmem>>, vector<1x32xf32>
    %36 = vector.broadcast %35 : vector<1x32xf32> to vector<8x32xf32>
    %37 = arith.addf %34, %36 : vector<8x32xf32>
    %38 = arith.negf %37 : vector<8x32xf32>
    %39 = math.exp %38 : vector<8x32xf32>
    %cst_14 = arith.constant 1.000000e+00 : f32
    %40 = vector.broadcast %cst_14 : f32 to vector<8x32xf32>
    %41 = arith.addf %40, %39 : vector<8x32xf32>
    %42 = arith.divf %40, %41 : vector<8x32xf32>
    %c104 = arith.constant 104 : index
    %c0_15 = arith.constant 0 : index
    %43 = vector.load %arg1[%c104, %c0_15] : memref<200x64xf32, #tpu.memory_space<vmem>>, vector<32x32xf32>
    %cst_16 = arith.constant dense<0.000000e+00> : vector<8x32xf32>
    %44 = tpu.matmul %42, %43, %cst_16 {dimension_numbers = #tpu.dot_dimension_numbers<[1], [0], [0], [1], [0, 0, 1, 1], [], []>} : vector<8x32xf32>, vector<32x32xf32>, vector<8x32xf32> -> vector<8x32xf32>
    %c4 = arith.constant 4 : index
    %c0_17 = arith.constant 0 : index
    %45 = vector.load %arg2[%c4, %c0_17] : memref<8x64xf32, #tpu.memory_space<vmem>>, vector<1x32xf32>
    %46 = vector.broadcast %45 : vector<1x32xf32> to vector<8x32xf32>
    %47 = arith.addf %44, %46 : vector<8x32xf32>
    %48 = arith.negf %47 : vector<8x32xf32>
    %49 = math.exp %48 : vector<8x32xf32>
    %cst_18 = arith.constant 1.000000e+00 : f32
    %50 = vector.broadcast %cst_18 : f32 to vector<8x32xf32>
    %51 = arith.addf %50, %49 : vector<8x32xf32>
    %52 = arith.divf %50, %51 : vector<8x32xf32>
    %53 = arith.addf %52, %32 : vector<8x32xf32>
    %c136 = arith.constant 136 : index
    %c0_19 = arith.constant 0 : index
    %54 = vector.load %arg1[%c136, %c0_19] : memref<200x64xf32, #tpu.memory_space<vmem>>, vector<32x32xf32>
    %cst_20 = arith.constant dense<0.000000e+00> : vector<8x32xf32>
    %55 = tpu.matmul %53, %54, %cst_20 {dimension_numbers = #tpu.dot_dimension_numbers<[1], [0], [0], [1], [0, 0, 1, 1], [], []>} : vector<8x32xf32>, vector<32x32xf32>, vector<8x32xf32> -> vector<8x32xf32>
    %c5 = arith.constant 5 : index
    %c0_21 = arith.constant 0 : index
    %56 = vector.load %arg2[%c5, %c0_21] : memref<8x64xf32, #tpu.memory_space<vmem>>, vector<1x32xf32>
    %57 = vector.broadcast %56 : vector<1x32xf32> to vector<8x32xf32>
    %58 = arith.addf %55, %57 : vector<8x32xf32>
    %59 = arith.negf %58 : vector<8x32xf32>
    %60 = math.exp %59 : vector<8x32xf32>
    %cst_22 = arith.constant 1.000000e+00 : f32
    %61 = vector.broadcast %cst_22 : f32 to vector<8x32xf32>
    %62 = arith.addf %61, %60 : vector<8x32xf32>
    %63 = arith.divf %61, %62 : vector<8x32xf32>
    %c168 = arith.constant 168 : index
    %c0_23 = arith.constant 0 : index
    %64 = vector.load %arg1[%c168, %c0_23] : memref<200x64xf32, #tpu.memory_space<vmem>>, vector<32x32xf32>
    %cst_24 = arith.constant dense<0.000000e+00> : vector<8x32xf32>
    %65 = tpu.matmul %63, %64, %cst_24 {dimension_numbers = #tpu.dot_dimension_numbers<[1], [0], [0], [1], [0, 0, 1, 1], [], []>} : vector<8x32xf32>, vector<32x32xf32>, vector<8x32xf32> -> vector<8x32xf32>
    %c6 = arith.constant 6 : index
    %c0_25 = arith.constant 0 : index
    %66 = vector.load %arg2[%c6, %c0_25] : memref<8x64xf32, #tpu.memory_space<vmem>>, vector<1x32xf32>
    %67 = vector.broadcast %66 : vector<1x32xf32> to vector<8x32xf32>
    %68 = arith.addf %65, %67 : vector<8x32xf32>
    %69 = vector.extract_strided_slice %68 {offsets = [0, 0], sizes = [8, 3], strides = [1, 1]} : vector<8x32xf32> to vector<8x3xf32>
    %70 = vector.extract_strided_slice %0 {offsets = [0, 3], sizes = [8, 3], strides = [1, 1]} : vector<8x16xf32> to vector<8x3xf32>
    %71 = arith.subf %69, %70 : vector<8x3xf32>
    %72 = vector.extract_strided_slice %0 {offsets = [0, 7], sizes = [8, 9], strides = [1, 1]} : vector<8x16xf32> to vector<8x9xf32>
    %73 = vector.extract_strided_slice %72 {offsets = [0, 0], sizes = [8, 3], strides = [1, 1]} : vector<8x9xf32> to vector<8x3xf32>
    %74 = vector.extract_strided_slice %71 {offsets = [0, 0], sizes = [8, 1], strides = [1, 1]} : vector<8x3xf32> to vector<8x1xf32>
    %75 = vector.broadcast %74 : vector<8x1xf32> to vector<8x3xf32>
    %76 = arith.mulf %73, %75 : vector<8x3xf32>
    %77 = vector.extract_strided_slice %72 {offsets = [0, 3], sizes = [8, 3], strides = [1, 1]} : vector<8x9xf32> to vector<8x3xf32>
    %78 = vector.extract_strided_slice %71 {offsets = [0, 1], sizes = [8, 1], strides = [1, 1]} : vector<8x3xf32> to vector<8x1xf32>
    %79 = vector.broadcast %78 : vector<8x1xf32> to vector<8x3xf32>
    %80 = arith.mulf %77, %79 : vector<8x3xf32>
    %81 = arith.addf %76, %80 : vector<8x3xf32>
    %82 = vector.extract_strided_slice %72 {offsets = [0, 6], sizes = [8, 3], strides = [1, 1]} : vector<8x9xf32> to vector<8x3xf32>
    %83 = vector.extract_strided_slice %71 {offsets = [0, 2], sizes = [8, 1], strides = [1, 1]} : vector<8x3xf32> to vector<8x1xf32>
    %84 = vector.broadcast %83 : vector<8x1xf32> to vector<8x3xf32>
    %85 = arith.mulf %82, %84 : vector<8x3xf32>
    %86 = arith.addf %81, %85 : vector<8x3xf32>
    %c0_26 = arith.constant 0 : index
    %c0_27 = arith.constant 0 : index
    %87 = vector.load %arg3[%c0_26, %c0_27] : memref<8x3xf32, #tpu.memory_space<vmem>>, vector<8x3xf32>
    tpu.vector_store %arg3[%c0_26, %c0_27], %86 {strides = array<i32>} : memref<8x3xf32, #tpu.memory_space<vmem>>, vector<8x3xf32>,
    return
  }
}

</mosaic_0001>

<bundles_post_ra>
// kernel: scorenet_forward.1
= control target key start
LH: loop header
LB: loop body
LE: loop exit
PB: predicated region body
PF: predicated region fallthrough
CT: control target
= control target key end

     0   :  { %v699_v0 = vmov 6   ;;  %v700_v2 = vmov 0   ;;  %v701_v22 = vmov 683565275   ;;  %v702_v24 = vmov 2475754826   ;;  %s913_s0 = inlined_call_operand.vmem [shape: f32[8,16], index: 0, kind: input, shape index: {}]   ;;  %s914_s2 = inlined_call_operand.vmem [shape: f32[8,64], index: 2, kind: input, shape index: {}]   ;;  %s915_s1 = inlined_call_operand.vmem [shape: f32[200,64], index: 1, kind: input, shape index: {}]   ;;  %s916_s3 = inlined_call_operand.vmem [shape: f32[8,3], index: 3, kind: output, shape index: {}]  }
   0x1   :  { %671 = vset.pattern.permute.xlu0 %v699_v0  ;;  %v737_v1 = vld [vmem:[%s913_s0] sm:$0xff]  ;;  %v340_v7 = vld [vmem:[%s915_s1 + $0x18] sm:$0xff]  ;;  %v339_v8 = vld [vmem:[%s915_s1 + $0x10] sm:$0xff]  ;;  %v703_v27 = vmov 2131351028   ;;  %s707_s6 = smov 8  }
   0x2   :  { %18 = vperm.xlu0 %671, %v737_v1   ;;  %v676_v3 = vld [vmem:[%s914_s2] ss:$0 sm:$0xff]  ;;  %359 = vmatpush.msra.mxu0 %v340_v7  ;;  %v338_v10 = vld [vmem:[%s915_s1 + $0x8] sm:$0xff]  ;;  %v704_v30 = vmov 2102212464   ;;  %s708_s0 = smov 96  }
   0x3   :  { %v337_v12 = vld [vmem:[%s915_s1] sm:$0xff]  ;;  %v705_v33 = vmov 920167782   ;;  %v706_v36 = vmov 1326507024   ;;  %s709_s12 = smov 125  }
   0x4   :  { %360 = vmatpush.msra.mxu0 %v339_v8  ;;  %s712_s23 = smov 122  }
   0x6   :  { %361 = vmatpush.msra.mxu0 %v338_v10 }
   0x8   :  { %362 = vmatpush.msra.mxu0 %v337_v12 }
   0xa   :  { %674 = vset.pattern.permute.xlu0 %v700_v2 }
  0x74   :  { %v19_v4 = vpop.permute.xlu0 %18 }
  0x75   :  { %v22_v5 = vmul.f32 %v676_v3, %v19_v4 }
  0x77   :  { %v744_v6 = vmul.f32 6.2831855, %v22_v5 }
  0x79   :  { %v30_v9 = vand.u32 2139095040, %v744_v6  ;;  %v27_v14 = vand.u32 2147483647, %v744_v6  ;;  %vm29_vm12 = vcmp.lt.s32.totalorder %v744_v6, 0 }
  0x7b   :  { %v31_v11 = vshrl.u32 %v30_v9, 23  ;;  %v34_v16 = vand.u32 8388607, %v27_v14  ;;  %vm28_vm13 = vcmp.le.f32.partialorder %v27_v14, 0.7853982 }
  0x7d   :  { %v640_v13 = vadd.s32 4294967169, %v31_v11  ;;  %v35_v20 = vor.u32 8388608, %v34_v16 }
  0x7f   :  { %v37_v15 = vadd.s32 1, %v640_v13  ;;  %v773_v43 = vshll.u32 %v35_v20, 8 }
  0x81   :  { %vm38_vm0 = vcmp.gt.s32.totalorder %v37_v15, 0  ;;  %v76_v52 = vand.u32 65535, %v773_v43  ;;  %v77_v53 = vshrl.u32 %v773_v43, 16 }
  0x82   :  { %v39_v17 = vsel %vm38_vm0, %v37_v15, 0 }
  0x83   :  { %v41_v18 = vand.u32 31, %v39_v17  ;;  %v764_v21 = vshrl.u32 %v39_v17, 5 }
  0x85   :  { %v762_v19 = vsub.s32 32, %v41_v18  ;;  %v44_v23 = vshll.u32 %v701_v22, %v41_v18  ;;  %v47_v25 = vshll.u32 %v702_v24, %v41_v18  ;;  %v50_v29 = vshll.u32 %v703_v27, %v41_v18 }
  0x86   :  { %v53_v32 = vshll.u32 %v704_v30, %v41_v18  ;;  %v56_v35 = vshll.u32 %v705_v33, %v41_v18  ;;  %vm59_vm1 = vcmp.lt.s32.totalorder %v764_v21, 1  ;;  %vm62_vm2 = vcmp.lt.s32.totalorder %v764_v21, 4 }
  0x87   :  { %v45_v26 = vshrl.u32 %v702_v24, %v762_v19  ;;  %v48_v28 = vshrl.u32 %v703_v27, %v762_v19  ;;  %v51_v31 = vshrl.u32 %v704_v30, %v762_v19  ;;  %v54_v34 = vshrl.u32 %v705_v33, %v762_v19 }
  0x88   :  { %v57_v37 = vshrl.u32 %v706_v36, %v762_v19  ;;  %vm61_vm3 = vcmp.lt.s32.totalorder %v764_v21, 3  ;;  %vm60_vm4 = vcmp.lt.s32.totalorder %v764_v21, 2  ;;  %v43_v18 = vshrl.u32 %v701_v22, %v762_v19 }
  0x89   :  { %v46_v38 = vor.u32 %v45_v26, %v44_v23  ;;  %v49_v39 = vor.u32 %v48_v28, %v47_v25  ;;  %v52_v40 = vor.u32 %v51_v31, %v50_v29  ;;  %v55_v41 = vor.u32 %v54_v34, %v53_v32 }
  0x8a   :  { %v58_v42 = vor.u32 %v57_v37, %v56_v35 }
  0x8b   :  { %v67_v44 = vsel %vm59_vm1, %v46_v38, %v49_v39  ;;  %v71_v45 = vsel %vm59_vm1, %v49_v39, %v52_v40  ;;  %v68_v46 = vsel %vm62_vm2, %v55_v41, 920167782  ;;  %v64_v15 = vsel %vm62_vm2, %v52_v40, 2102212464 }
  0x8c   :  { %v72_v47 = vsel %vm62_vm2, %v58_v42, 1326507024  ;;  %v69_v48 = vsel %vm61_vm3, %v52_v40, %v68_v46  ;;  %v63_v27 = vsel %vm59_vm1, %v43_v18, %v46_v38  ;;  %v65_v28 = vsel %vm61_vm3, %v49_v39, %v64_v15 }
  0x8d   :  { %v73_v49 = vsel %vm61_vm3, %v55_v41, %v72_v47  ;;  %v70_v50 = vsel %vm60_vm4, %v67_v44, %v69_v48  ;;  %v66_v19 = vsel %vm60_vm4, %v63_v27, %v65_v28 }
  0x8e   :  { %v74_v51 = vsel %vm60_vm4, %v71_v45, %v73_v49  ;;  %v100_v56 = vand.u32 65535, %v70_v50  ;;  %v101_v57 = vshrl.u32 %v70_v50, 16  ;;  %v120_v35 = vmul.u32 %v773_v43, %v66_v19 }
  0x8f   :  { %v78_v54 = vand.u32 65535, %v74_v51  ;;  %v79_v55 = vshrl.u32 %v74_v51, 16 }
  0x90   :  { %v103_v60 = vmul.u32 %v101_v57, %v76_v52  ;;  %v104_v61 = vmul.u32 %v100_v56, %v77_v53  ;;  %v102_v3 = vmul.u32 %v100_v56, %v76_v52  ;;  %v105_v8 = vmul.u32 %v101_v57, %v77_v53 }
  0x91   :  { %v81_v58 = vmul.u32 %v79_v55, %v76_v52  ;;  %v82_v59 = vmul.u32 %v78_v54, %v77_v53  ;;  %v80_v62 = vmul.u32 %v78_v54, %v76_v52  ;;  %v83_v0 = vmul.u32 %v79_v55, %v77_v53 }
  0x92   :  { %v106_v4 = vshll.u32 %v103_v60, 16  ;;  %v108_v10 = vshll.u32 %v104_v61, 16  ;;  %v107_v25 = vshrl.u32 %v103_v60, 16  ;;  %v109_v31 = vshrl.u32 %v104_v61, 16 }
  0x93   :  { %v84_v63 = vshll.u32 %v81_v58, 16  ;;  %v86_v5 = vshll.u32 %v82_v59, 16  ;;  %v85_v20 = vshrl.u32 %v81_v58, 16  ;;  %v87_v29 = vshrl.u32 %v82_v59, 16 }
  0x94   :  { %vm110_vm6 = vc.u32 %v102_v3, %v106_v4  ;;  %v112_v11 = vadd.s32 %v106_v4, %v102_v3 }
  0x95   :  { %vm88_vm5 = vc.u32 %v80_v62, %v84_v63  ;;  %v90_v7 = vadd.s32 %v84_v63, %v80_v62  ;;  %v111_v13 = vsel %vm110_vm6, 1, %v700_v2  ;;  %vm343_vm6 = vcmask 261120  }
  0x96   :  { %v89_v9 = vsel %vm88_vm5, 1, %v700_v2  ;;  %v113_v17 = vadd.s32 %v111_v13, %v105_v8  ;;  %vm114_vm8 = vc.u32 %v112_v11, %v108_v10  ;;  %v116_v34 = vadd.s32 %v112_v11, %v108_v10 }
  0x97   :  { %v91_v12 = vadd.s32 %v89_v9, %v83_v0  ;;  %vm92_vm7 = vc.u32 %v90_v7, %v86_v5  ;;  %v115_v24 = vsel %vm114_vm8, 1, %v700_v2  ;;  %v24_v10 = vlaneseq }
  0x98   :  { %v93_v16 = vsel %vm92_vm7, 1, %v700_v2  ;;  %v117_v26 = vadd.s32 %v115_v24, %v113_v17  ;;  %vm170_vm5 = vweird.f32 %v744_v6 }
  0x99   :  { %v95_v23 = vadd.s32 %v93_v16, %v91_v12  ;;  %v25_v14 = vand.u32 127, %v24_v10 }
  0x9a   :  { %v118_v32 = vadd.s32 %v117_v26, %v107_v25 }
  0x9b   :  { %v96_v30 = vadd.s32 %v95_v23, %v85_v20  ;;  %vm26_vm14 = vcmp.lt.s32.totalorder %v25_v14, 16 }
  0x9c   :  { %v119_v22 = vadd.s32 %v118_v32, %v109_v31 }
  0x9d   :  { %v97_v33 = vadd.s32 %v96_v30, %v87_v29 }
  0x9e   :  { %v123_v2 = vadd.s32 1, %v119_v22 }
  0x9f   :  { %vm122_vm9 = vc.u32 %v97_v33, %v116_v34  ;;  %v121_v21 = vadd.s32 %v116_v34, %v97_v33 }
  0xa0   :  { %v124_v36 = vsel %vm122_vm9, %v123_v2, %v119_v22  ;;  %v677_v22 = vld [vmem:[%s914_s2 + $0x1] ss:$0 sm:$0xff] }
  0xa1   :  { %v125_v37 = vadd.s32 %v124_v36, %v120_v35  ;;  %v396_v2 = vld [vmem:[%s915_s1 + $0x40] sm:$0xff] }
  0xa2   :  { %414 = vmatpush.msra.mxu1 %v396_v2 }
  0xa3   :  { %v126_v38 = vadd.s32 536870912, %v125_v37 }
  0xa5   :  { %v127_v40 = vshrl.u32 %v126_v38, 30 }
  0xa7   :  { %v128_v41 = vshll.u32 %v127_v40, 30  ;;  %v151_v60 = vsub.s32 4, %v127_v40 }
  0xa9   :  { %v129_v39 = vsub.s32 %v125_v37, %v128_v41  ;;  %v152_v3 = vsel %vm29_vm12, %v151_v60, %v127_v40  ;;  %v394_v37 = vld [vmem:[%s915_s1 + $0x30] sm:$0xff]  ;;  %v393_v40 = vld [vmem:[%s915_s1 + $0x28] sm:$0xff] }
  0xaa   :  { %v154_v7 = vsel %vm28_vm13, 0, %v152_v3  ;;  %v679_v3 = vld [vmem:[%s914_s2 + $0x3] ss:$0 sm:$0xff] }
  0xab   :  { %vm130_vm10 = vcmp.lt.s32.totalorder %v129_v39, 0  ;;  %v131_v42 = vsub.s32 0, %v129_v39  ;;  %v171_v13 = vadd.s32 3, %v154_v7  ;;  %v326_v20 = vand.u32 3, %v154_v7 }
  0xad   :  { %v132_v44 = vsel %vm130_vm10, %v131_v42, %v129_v39  ;;  %v172_v23 = vand.u32 3, %v171_v13  ;;  %vm327_vm15 = vcmp.lt.s32.totalorder %v326_v20, 2  ;;  %vm328_vm0 = vcmp.eq.s32.totalorder %v326_v20, 0 }
  0xae   :  { %v133_v45 = vclz %v132_v44  ;;  %vm331_vm4 = vcmp.eq.s32.totalorder %v326_v20, 2 }
  0xaf   :  { %vm173_vm1 = vcmp.lt.s32.totalorder %v172_v23, 2  ;;  %vm174_vm2 = vcmp.eq.s32.totalorder %v172_v23, 0  ;;  %vm177_vm3 = vcmp.eq.s32.totalorder %v172_v23, 2  ;;  %v526_v23 = vld [vmem:[%s915_s1 + $0xa0] sm:$0xff] }
  0xb0   :  { %v641_v46 = vadd.s32 4294967294, %v133_v45  ;;  %544 = vmatpush.msrb.mxu0 %v526_v23 }
  0xb2   :  { %vm642_vm11 = vcmp.lt.s32.totalorder %v641_v46, 0 }
  0xb3   :  { %v136_v47 = vsel %vm642_vm11, 0, %v641_v46  ;;  %vm390_vm11 = vcmask 64512  }
  0xb4   :  { %v137_v48 = vsub.s32 32, %v136_v47  ;;  %v141_v49 = vsub.s32 4294967266, %v136_v47  ;;  %v138_v50 = vshll.u32 %v129_v39, %v136_v47 }
  0xb6   :  { %v139_v51 = vshrl.u32 %v121_v21, %v137_v48  ;;  %v142_v52 = vadd.s32 127, %v141_v49 }
  0xb8   :  { %v140_v43 = vor.u32 %v139_v51, %v138_v50  ;;  %v143_v53 = vshll.u32 %v142_v52, 23  ;;  %v392_v52 = vld [vmem:[%s915_s1 + $0x20] sm:$0xff] }
  0xba   :  { %v144_v54 = vor.u32 4788187, %v143_v53  ;;  %v147_v56 = vcvt.s32.f32 %v140_v43  ;;  %v426_v43 = vld [vmem:[%s915_s1 + $0x60] sm:$0xff]  ;;  %v425_v53 = vld [vmem:[%s915_s1 + $0x58] sm:$0xff] }
  0xbb   :  { %444 = vmatpush.msra.mxu2 %v426_v43 }
  0xbc   :  { %v145_v55 = vand.u32 2147483647, %v144_v54 }
  0xbd   :  { %445 = vmatpush.msra.mxu2 %v425_v53 }
  0xbe   :  { %v148_v57 = vmul.f32 %v147_v56, %v145_v55  ;;  %v424_v56 = vld [vmem:[%s915_s1 + $0x50] sm:$0xff] }
  0xbf   :  { %446 = vmatpush.msra.mxu2 %v424_v56 }
  0xc0   :  { %v149_v58 = vxor.u32 2147483648, %v148_v57 }
  0xc2   :  { %v150_v59 = vsel %vm29_vm12, %v149_v58, %v148_v57  ;;  %vm399_vm12 = vcmask 326656   ;;  %v423_v57 = vld [vmem:[%s915_s1 + $0x48] sm:$0xff]  ;;  %v678_v58 = vld [vmem:[%s914_s2 + $0x2] ss:$0 sm:$0xff] }
  0xc3   :  { %v153_v61 = vsel %vm28_vm13, %v744_v6, %v150_v59  ;;  %v395_v6 = vld [vmem:[%s915_s1 + $0x38] sm:$0xff]  ;;  %447 = vmatpush.msra.mxu2 %v423_v57 }
  0xc4   :  { %v155_v62 = vmul.f32 %v153_v61, %v153_v61  ;;  %415 = vmatpush.msra.mxu1 %v395_v6 }
  0xc6   :  { %v156_v63 = vmul.f32 -0.001358992, %v155_v62  ;;  %v163_v0 = vmul.f32 -0.00019511016, %v155_v62  ;;  %416 = vmatpush.msra.mxu1 %v394_v37 }
  0xc8   :  { %v157_v4 = vadd.f32 0.041655596, %v156_v63  ;;  %v164_v5 = vadd.f32 0.008332121, %v163_v0  ;;  %417 = vmatpush.msra.mxu1 %v393_v40  ;;  %v472_v63 = vld [vmem:[%s915_s1 + $0x70] sm:$0xff]  ;;  %v471_v0 = vld [vmem:[%s915_s1 + $0x68] sm:$0xff] }
  0xca   :  { %v158_v8 = vmul.f32 %v157_v4, %v155_v62  ;;  %v165_v9 = vmul.f32 %v164_v5, %v155_v62  ;;  %418 = vmatpush.msra.mxu1 %v392_v52 }
  0xcc   :  { %v159_v11 = vadd.f32 -0.4999988, %v158_v8  ;;  %v166_v12 = vadd.f32 -0.16666654, %v165_v9 }
  0xce   :  { %v160_v15 = vmul.f32 %v159_v11, %v155_v62  ;;  %v167_v16 = vmul.f32 %v166_v12, %v155_v62  ;;  %v473_v62 = vld [vmem:[%s915_s1 + $0x78] sm:$0xff] }
  0xd0   :  { %v161_v17 = vadd.f32 1.0, %v160_v15  ;;  %v168_v18 = vadd.f32 1.0, %v167_v16 }
  0xd2   :  { %v169_v24 = vmul.f32 %v168_v18, %v153_v61  ;;  %v178_v25 = vxor.u32 2147483648, %v161_v17  ;;  %v474_v61 = vld [vmem:[%s915_s1 + $0x80] sm:$0xff] }
  0xd3   :  { %492 = vmatpush.msra.mxu3 %v474_v61  ;;  %v682_v61 = vld [vmem:[%s914_s2 + $0x6] ss:$0 sm:$0xff] }
  0xd4   :  { %v175_v26 = vxor.u32 2147483648, %v169_v24  ;;  %v179_v28 = vsel %vm177_vm3, %v178_v25, %v169_v24  ;;  %v333_v30 = vsel %vm331_vm4, %v178_v25, %v169_v24  ;;  %v525_v24 = vld [vmem:[%s915_s1 + $0x98] sm:$0xff]  ;;  %v524_v25 = vld [vmem:[%s915_s1 + $0x90] sm:$0xff] }
  0xd5   :  { %493 = vmatpush.msra.mxu3 %v473_v62  ;;  %545 = vmatpush.msrb.mxu0 %v525_v24 }
  0xd6   :  { %v176_v27 = vsel %vm174_vm2, %v161_v17, %v175_v26  ;;  %v330_v29 = vsel %vm328_vm0, %v161_v17, %v175_v26  ;;  %v523_v26 = vld [vmem:[%s915_s1 + $0x88] sm:$0xff] }
  0xd7   :  { %v180_v31 = vsel %vm173_vm1, %v176_v27, %v179_v28  ;;  %v334_v32 = vsel %vm327_vm15, %v330_v29, %v333_v30  ;;  %494 = vmatpush.msra.mxu3 %v472_v63  ;;  %546 = vmatpush.msrb.mxu0 %v524_v25  ;;  %v680_v27 = vld [vmem:[%s914_s2 + $0x4] ss:$0 sm:$0xff] }
  0xd8   :  { %v181_v33 = vsel %vm170_vm5, nan, %v180_v31  ;;  %v335_v34 = vsel %vm170_vm5, nan, %v334_v32 }
  0xd9   :  { %v336_v19 = vsel %vm26_vm14, %v181_v33, %v335_v34  ;;  %495 = vmatpush.msra.mxu3 %v471_v0  ;;  %547 = vmatpush.msrb.mxu0 %v523_v26 }
  0xda   :  { %646 = vmatmul.msk.f32.vlgmr.msra.gmra.mxu0 %vm343_vm6, %v336_v19 }
 0x157   :  { %v364_v35 = vpop.f32.mrf.mxu0 }
 0x158   :  { %v365_v36 = vadd.f32 %v677_v22, %v364_v35 }
 0x15a   :  { %v647_v38 = vmul.f32 -1.442695, %v365_v36 }
 0x15c   :  { %683 = vpow2.f32 %v647_v38 }
 0x162   :  { %v684_v41 = vpop.eup %683 }
 0x163   :  { %v370_v39 = vadd.f32 1.0, %v684_v41 }
 0x165   :  { %685 = vrcp.f32 %v370_v39  ;;  %v382_v46 = vand.u32 2147483648, %v370_v39  ;;  %v380_v21 = vand.u32 2147483647, %v370_v39  ;;  %vm376_vm8 = vweird.f32 %v370_v39 }
 0x167   :  { %v383_v49 = vor.u32 1.1754944e-38, %v382_v46  ;;  %vm381_vm10 = vcmp.eq.f32.partialorder %v380_v21, 8.507059e+37  ;;  %v681_v46 = vld [vmem:[%s914_s2 + $0x5] ss:$0 sm:$0xff]  ;;  %s713_s2 = smov 121  }
 0x16b   :  { %v686_v42 = vpop.eup %685 }
 0x16c   :  { %v372_v44 = vmul.f32 %v686_v42, %v370_v39  ;;  %vm377_vm7 = vweird.f32 %v686_v42  ;;  %v574_v39 = vld [vmem:[%s915_s1 + $0xc0] sm:$0xff] }
 0x16d   :  { %vm378_vm9 = vmor %vm376_vm8, %vm377_vm7  ;;  %592 = vmatpush.msrb.mxu2 %v574_v39 }
 0x16e   :  { %v373_v45 = vsub.f32 1.0, %v372_v44  ;;  %v572_v44 = vld [vmem:[%s915_s1 + $0xb0] sm:$0xff] }
 0x170   :  { %v374_v47 = vmul.f32 %v686_v42, %v373_v45  ;;  %v571_v45 = vld [vmem:[%s915_s1 + $0xa8] sm:$0xff] }
 0x172   :  { %v375_v48 = vadd.f32 %v686_v42, %v374_v47 }
 0x174   :  { %v379_v50 = vsel %vm378_vm9, %v686_v42, %v375_v48  ;;  %v573_v42 = vld [vmem:[%s915_s1 + $0xb8] sm:$0xff] }
 0x175   :  { %v384_v51 = vsel %vm381_vm10, %v383_v49, %v379_v50  ;;  %593 = vmatpush.msrb.mxu2 %v573_v42 }
 0x176   :  { %387 = vrot.lane.b32.xlu0 %v384_v51, %s707_s6 }
 0x177   :  { %594 = vmatpush.msrb.mxu2 %v572_v44 }
 0x179   :  { %595 = vmatpush.msrb.mxu2 %v571_v45 }
 0x1e8   :  { %v388_v54 = vpop.permute.xlu0 %387 }
 0x1e9   :  { %v391_v55 = vsel %vm390_vm11, %v737_v1, %v388_v54 }
 0x1ea   :  { %648 = vmatmul.msk.f32.vlgmr.msra.gmra.mxu1 %vm399_vm12, %v391_v55 }
 0x267   :  { %v420_v59 = vpop.f32.mrf.mxu1 }
 0x268   :  { %v421_v60 = vadd.f32 %v678_v58, %v420_v59 }
 0x26a   :  { %519 = vrot.lane.b32.xlu1 %v421_v60, %s708_s0  ;;  %649 = vmatmul.msk.f32.vlgmr.msra.gmra.mxu2 %vm343_vm6, %v421_v60  ;;  %v710_v60 = vmov 1  }
 0x26b   :  { %672 = vset.pattern.permute.xlu2 %v710_v60 }
 0x272   :  { %600 = vrot.lane.b32.xlu1 %v737_v1, %s709_s12 }
 0x2dc   :  { %v520_v38 = vpop.permute.xlu1 %519 }
 0x2e4   :  { %v601_v63 = vpop.permute.xlu1 %600 }
 0x2ed   :  { %v449_v4 = vpop.f32.mrf.mxu2 }
 0x2ee   :  { %v450_v5 = vadd.f32 %v679_v3, %v449_v4  ;;  %v711_v4 = vmov 2  }
 0x2f0   :  { %v650_v7 = vmul.f32 -1.442695, %v450_v5 }
 0x2f2   :  { %687 = vpow2.f32 %v650_v7 }
 0x2f8   :  { %v688_v8 = vpop.eup %687 }
 0x2f9   :  { %v455_v9 = vadd.f32 1.0, %v688_v8 }
 0x2fb   :  { %689 = vrcp.f32 %v455_v9  ;;  %v467_v13 = vand.u32 2147483648, %v455_v9  ;;  %v465_v16 = vand.u32 2147483647, %v455_v9  ;;  %vm461_vm14 = vweird.f32 %v455_v9 }
 0x2fd   :  { %v468_v17 = vor.u32 1.1754944e-38, %v467_v13  ;;  %vm466_vm0 = vcmp.eq.f32.partialorder %v465_v16, 8.507059e+37 }
 0x301   :  { %v690_v10 = vpop.eup %689 }
 0x302   :  { %v457_v11 = vmul.f32 %v690_v10, %v455_v9  ;;  %vm462_vm13 = vweird.f32 %v690_v10 }
 0x303   :  { %vm463_vm15 = vmor %vm461_vm14, %vm462_vm13 }
 0x304   :  { %v458_v12 = vsub.f32 1.0, %v457_v11 }
 0x306   :  { %v459_v15 = vmul.f32 %v690_v10, %v458_v12 }
 0x308   :  { %v460_v14 = vadd.f32 %v690_v10, %v459_v15 }
 0x30a   :  { %v464_v18 = vsel %vm463_vm15, %v690_v10, %v460_v14 }
 0x30b   :  { %v469_v20 = vsel %vm466_vm0, %v468_v17, %v464_v18 }
 0x30c   :  { %651 = vmatmul.msk.f32.vlgmr.msra.gmra.mxu3 %vm343_vm6, %v469_v20 }
 0x38f   :  { %v497_v28 = vpop.f32.mrf.mxu3 }
 0x390   :  { %v498_v29 = vadd.f32 %v680_v27, %v497_v28 }
 0x392   :  { %v652_v30 = vmul.f32 -1.442695, %v498_v29 }
 0x394   :  { %691 = vpow2.f32 %v652_v30 }
 0x39a   :  { %v692_v31 = vpop.eup %691 }
 0x39b   :  { %v503_v32 = vadd.f32 1.0, %v692_v31 }
 0x39d   :  { %693 = vrcp.f32 %v503_v32  ;;  %v515_v22 = vand.u32 2147483648, %v503_v32  ;;  %v513_v6 = vand.u32 2147483647, %v503_v32  ;;  %vm509_vm2 = vweird.f32 %v503_v32 }
 0x39f   :  { %v516_v36 = vor.u32 1.1754944e-38, %v515_v22  ;;  %vm514_vm4 = vcmp.eq.f32.partialorder %v513_v6, 8.507059e+37 }
 0x3a3   :  { %v694_v33 = vpop.eup %693 }
 0x3a4   :  { %v505_v34 = vmul.f32 %v694_v33, %v503_v32  ;;  %vm510_vm1 = vweird.f32 %v694_v33 }
 0x3a5   :  { %vm511_vm3 = vmor %vm509_vm2, %vm510_vm1 }
 0x3a6   :  { %v506_v19 = vsub.f32 1.0, %v505_v34 }
 0x3a8   :  { %v507_v2 = vmul.f32 %v694_v33, %v506_v19 }
 0x3aa   :  { %v508_v35 = vadd.f32 %v694_v33, %v507_v2 }
 0x3ac   :  { %v512_v37 = vsel %vm511_vm3, %v694_v33, %v508_v35 }
 0x3ad   :  { %v517_v40 = vsel %vm514_vm4, %v516_v36, %v512_v37 }
 0x3ae   :  { %v522_v41 = vadd.f32 %v520_v38, %v517_v40 }
 0x3b0   :  { %653 = vmatmul.msk.f32.vlgmr.msrb.gmra.mxu0 %vm343_vm6, %v522_v41 }
 0x42d   :  { %v549_v47 = vpop.f32.mrf.mxu0 }
 0x42e   :  { %v550_v21 = vadd.f32 %v681_v46, %v549_v47 }
 0x430   :  { %v654_v48 = vmul.f32 -1.442695, %v550_v21 }
 0x432   :  { %695 = vpow2.f32 %v654_v48 }
 0x438   :  { %v696_v49 = vpop.eup %695 }
 0x439   :  { %v555_v50 = vadd.f32 1.0, %v696_v49 }
 0x43b   :  { %697 = vrcp.f32 %v555_v50  ;;  %v567_v53 = vand.u32 2147483648, %v555_v50  ;;  %v565_v55 = vand.u32 2147483647, %v555_v50  ;;  %vm561_vm7 = vweird.f32 %v555_v50 }
 0x43d   :  { %v568_v57 = vor.u32 1.1754944e-38, %v567_v53  ;;  %vm566_vm9 = vcmp.eq.f32.partialorder %v565_v55, 8.507059e+37 }
 0x441   :  { %v698_v51 = vpop.eup %697 }
 0x442   :  { %v557_v52 = vmul.f32 %v698_v51, %v555_v50  ;;  %vm562_vm5 = vweird.f32 %v698_v51 }
 0x443   :  { %vm563_vm8 = vmor %vm561_vm7, %vm562_vm5 }
 0x444   :  { %v558_v43 = vsub.f32 1.0, %v557_v52 }
 0x446   :  { %v559_v54 = vmul.f32 %v698_v51, %v558_v43 }
 0x448   :  { %v560_v56 = vadd.f32 %v698_v51, %v559_v54 }
 0x44a   :  { %v564_v58 = vsel %vm563_vm8, %v698_v51, %v560_v56 }
 0x44b   :  { %v569_v59 = vsel %vm566_vm9, %v568_v57, %v564_v58 }
 0x44c   :  { %655 = vmatmul.msk.f32.vlgmr.msrb.gmra.mxu2 %vm343_vm6, %v569_v59  ;;  %vm634_vm6 = vcmask 23552  }
 0x4cf   :  { %v597_v62 = vpop.f32.mrf.mxu2 }
 0x4d0   :  { %v598_v0 = vadd.f32 %v682_v61, %v597_v62 }
 0x4d2   :  { %v603_v3 = vsub.f32 %v598_v0, %v601_v63 }
 0x4d4   :  { %606 = vperm.xlu0 %674, %v603_v3   ;;  %611 = vperm.xlu2 %672, %v603_v3  }
 0x4dc   :  { %673 = vset.pattern.permute.xlu2 %v711_v4  ;;  %675 = vset.pattern.permute.xlu0 %v711_v4 }
 0x4dd   :  { %621 = vperm.xlu2 %673, %v603_v3  }
 0x52e   :  { %v612_v5 = vpop.permute.xlu2 %611 }
 0x52f   :  { %v614_v7 = vmul.f32 %v612_v5, %v737_v1 }
 0x531   :  { %616 = vrot.lane.b32.xlu1 %v614_v7, %s709_s12 }
 0x537   :  { %v622_v8 = vpop.permute.xlu2 %621 }
 0x538   :  { %v624_v9 = vmul.f32 %v622_v8, %v737_v1 }
 0x53a   :  { %626 = vrot.lane.b32.xlu2 %v624_v9, %s712_s23 }
 0x546   :  { %v607_v10 = vpop.permute.xlu0 %606 }
 0x547   :  { %v609_v11 = vmul.f32 %v607_v10, %v737_v1 }
 0x594   :  { %v627_v15 = vpop.permute.xlu2 %626 }
 0x5a3   :  { %v617_v12 = vpop.permute.xlu1 %616 }
 0x5a4   :  { %v619_v13 = vadd.f32 %v617_v12, %v609_v11 }
 0x5a6   :  { %v629_v16 = vadd.f32 %v627_v15, %v619_v13 }
 0x5a8   :  { %631 = vrot.lane.b32.xlu1 %v629_v16, %s713_s2 }
 0x61a   :  { %v632_v14 = vpop.permute.xlu1 %631 }
 0x61b   :  { %635 = vst.msk [vmem:[%s916_s3] sm:$0xff] %vm634_vm6, %v632_v14 }

</bundles_post_ra>
